<compile_context>
chip_gen: v7x
topology: tpu7x:2x2x1
jax: 0.10.0
libtpu: 0.0.40
codegen_flags: <defaults>
</compile_context>

<pallas_src>
import functools

import jax
import jax.numpy as jnp
from jax.experimental import pallas as pl
from jax.experimental.pallas import tpu as pltpu


def _frame_avg_pool_kernel(*refs, kernel_size, stride, has_pos):
    # refs (has_pos=True):  x_ref (Bb, C_in, T), w_ref (hidden, C_in),
    #                       b_ref (hidden, 1),   pos_ref (hidden, num_clips),
    #                       o_ref (Bb, hidden, num_clips)
    # refs (has_pos=False): same without pos_ref.
    if has_pos:
        x_ref, w_ref, b_ref, pos_ref, o_ref = refs
    else:
        x_ref, w_ref, b_ref, o_ref = refs
        pos_ref = None

    bb, _, t = x_ref.shape
    num_clips = o_ref.shape[2]

    w = w_ref[...]                       # (hidden, C_in)  compute dtype (bf16/f32)
    bias = b_ref[...]                    # (hidden, 1)     f32
    pos = pos_ref[...] if has_pos else None   # (hidden, num_clips) f32

    # AvgPool1d(kernel_size, stride) as a (T, num_clips) matrix, built in-kernel
    # (VPU iota + compare) so no HBM stream / VMEM double-buffer is needed.
    t_idx = jax.lax.broadcasted_iota(jnp.int32, (t, num_clips), 0)
    c_idx = jax.lax.broadcasted_iota(jnp.int32, (t, num_clips), 1)
    start = c_idx * stride
    in_window = (t_idx >= start) & (t_idx < start + kernel_size)
    pool_t = jnp.where(in_window, jnp.float32(1.0 / kernel_size), jnp.float32(0.0))

    # Unrolled over the small per-step batch block; each iteration is an independent
    # (hidden, C_in) x (C_in, T) MXU matmul with T as the wide N dimension.
    for bi in range(bb):
        xb = x_ref[bi]                                                   # (C_in, T)
        h = jnp.dot(w, xb, preferred_element_type=jnp.float32)           # (hidden, T) f32
        h = jnp.maximum(h + bias, 0.0)                                   # Conv1d bias + ReLU
        pooled = jnp.dot(h, pool_t, preferred_element_type=jnp.float32)  # (hidden, num_clips)
        if has_pos:
            pooled = pooled + pos
        o_ref[bi] = pooled.astype(o_ref.dtype)


def frame_avg_pool(visual_input, conv_w, conv_b, pos_embed, kernel_size, stride,
                   *, compute_dtype=jnp.bfloat16, batch_block=8):
    """visual_input: (B, C_in, T)        [NCW, PyTorch convention]
       conv_w:       (hidden, C_in)      (Conv1d weight with the k=1 dim squeezed)
       conv_b:       (hidden,)
       pos_embed:    (num_clips, hidden) or None
       returns:      (B, hidden, num_clips)  [NCW]"""
    B, c_in, T = visual_input.shape
    hidden = conv_w.shape[0]
    num_clips = (T - kernel_size) // stride + 1
    has_pos = pos_embed is not None

    # Parameter prep only (tiny tensors); activations keep their NCW layout untouched.
    x = visual_input.astype(compute_dtype)                     # (B, C_in, T)
    w = conv_w.astype(compute_dtype)                           # (hidden, C_in)
    b = conv_b.reshape(hidden, 1).astype(jnp.float32)          # (hidden, 1)

    bb = max(1, min(batch_block, B))
    grid = (pl.cdiv(B, bb),)

    operands = [x, w, b]
    in_specs = [
        pl.BlockSpec((bb, c_in, T), lambda i: (i, 0, 0)),
        pl.BlockSpec((hidden, c_in), lambda i: (0, 0)),
        pl.BlockSpec((hidden, 1), lambda i: (0, 0)),
    ]
    if has_pos:
        pos = jnp.transpose(pos_embed, (1, 0)).astype(jnp.float32)   # (hidden, num_clips)
        operands.append(pos)
        in_specs.append(pl.BlockSpec((hidden, num_clips), lambda i: (0, 0)))

    flops = 2 * B * hidden * c_in * T + 2 * B * hidden * T * num_clips
    bytes_accessed = int(sum(int(o.size) * o.dtype.itemsize for o in operands)
                         + B * hidden * num_clips * 4)

    kernel = functools.partial(_frame_avg_pool_kernel,
                               kernel_size=kernel_size, stride=stride, has_pos=has_pos)

    out = pl.pallas_call(
        kernel,
        out_shape=jax.ShapeDtypeStruct((B, hidden, num_clips), jnp.float32),
        grid_spec=pltpu.PrefetchScalarGridSpec(
            num_scalar_prefetch=0,
            grid=grid,
            in_specs=in_specs,
            out_specs=pl.BlockSpec((bb, hidden, num_clips), lambda i: (i, 0, 0)),
        ),
        compiler_params=pltpu.CompilerParams(dimension_semantics=("parallel",)),
        cost_estimate=pl.CostEstimate(flops=flops, transcendentals=0,
                                      bytes_accessed=bytes_accessed),
    )(*operands)
    return out   # already (B, hidden, num_clips) — no wrapper transpose


def reference_frame_avg_pool(visual_input, conv_w, conv_b, pos_embed, kernel_size, stride):
    """Plain-JAX f32 reference mirroring the PyTorch forward (eval mode)."""
    h = jnp.einsum("bct,hc->bht", visual_input, conv_w) + conv_b[None, :, None]
    h = jnp.maximum(h, 0.0)
    T = h.shape[-1]
    num_clips = (T - kernel_size) // stride + 1
    clips = [h[:, :, i * stride: i * stride + kernel_size].mean(axis=-1)
             for i in range(num_clips)]
    out = jnp.stack(clips, axis=-1)                                  # (B, hidden, num_clips)
    if pos_embed is not None:
        out = out + jnp.transpose(pos_embed, (1, 0))[None]
    return out


if __name__ == "__main__":
    # Module hyperparameters (small but representative).
    input_size = 32
    hidden_size = 32
    kernel_size = 4
    stride = 4

    B, T = 2, 16
    num_clips = (T - kernel_size) // stride + 1                      # 4

    key = jax.random.PRNGKey(0)
    k_x, k_w, k_b, k_pos = jax.random.split(key, 4)

    visual_input = jax.random.normal(k_x, (B, input_size, T), jnp.float32)
    conv_w = jax.random.normal(k_w, (hidden_size, input_size), jnp.float32) * 0.1
    conv_b = jax.random.normal(k_b, (hidden_size,), jnp.float32) * 0.1
    # LearnPositionalEncoding: nn.init.uniform_ -> U[0, 1), shape (num_clips, hidden).
    pos_embed = jax.random.uniform(k_pos, (num_clips, hidden_size), jnp.float32)

    ref = reference_frame_avg_pool(visual_input, conv_w, conv_b, pos_embed,
                                   kernel_size, stride)

    # Exact f32 path.
    out_f32 = frame_avg_pool(visual_input, conv_w, conv_b, pos_embed,
                             kernel_size, stride, compute_dtype=jnp.float32)
    out_f32 = jax.block_until_ready(out_f32)
    assert out_f32.shape == (B, hidden_size, num_clips), out_f32.shape
    assert jnp.allclose(out_f32, ref, atol=1e-5, rtol=1e-5), "f32 mismatch vs reference"

    # Default bf16-input path (f32 accumulation): halves activation HBM bytes.
    out_bf16 = frame_avg_pool(visual_input, conv_w, conv_b, pos_embed,
                              kernel_size, stride)
    out_bf16 = jax.block_until_ready(out_bf16)
    assert out_bf16.shape == (B, hidden_size, num_clips), out_bf16.shape
    assert jnp.allclose(out_bf16, ref, atol=3e-2, rtol=3e-2), "bf16 mismatch vs reference"

    # use_position=False specialization (no pos input / add at all).
    out_np = frame_avg_pool(visual_input, conv_w, conv_b, None,
                            kernel_size, stride, compute_dtype=jnp.float32)
    out_np = jax.block_until_ready(out_np)
    ref_np = reference_frame_avg_pool(visual_input, conv_w, conv_b, None,
                                      kernel_size, stride)
    assert jnp.allclose(out_np, ref_np, atol=1e-5, rtol=1e-5), "no-pos mismatch vs reference"

    print("KERNEL_OK")
</pallas_src>

<mosaic_0001>
module attributes {stable_mosaic.version = 11 : i64} {
  func.func @_frame_avg_pool_kernel(%arg0: i32, %arg1: memref<2x32x16xf32, #tpu.memory_space<vmem>>, %arg2: memref<32x32xf32, #tpu.memory_space<vmem>>, %arg3: memref<32x1xf32, #tpu.memory_space<vmem>>, %arg4: memref<32x4xf32, #tpu.memory_space<vmem>>, %arg5: memref<2x32x4xf32, #tpu.memory_space<vmem>>) attributes {dimension_semantics = [#tpu.dimension_semantics<parallel>], iteration_bounds = array<i64: 1>, scalar_prefetch = 0 : i64, scratch_operands = 0 : i64, tpu.core_type = #tpu.core_type<tc>, window_params = [{transform_indices = @transform_0, window_bounds = array<i64: 2, 32, 16>}, {pipeline_mode = #tpu.pipeline_mode<synchronous>, transform_indices = @transform_1, window_bounds = array<i64: 32, 32>}, {pipeline_mode = #tpu.pipeline_mode<synchronous>, transform_indices = @transform_2, window_bounds = array<i64: 32, 1>}, {pipeline_mode = #tpu.pipeline_mode<synchronous>, transform_indices = @transform_3, window_bounds = array<i64: 32, 4>}, {transform_indices = @transform_4, window_bounds = array<i64: 2, 32, 4>}]} {
    %c0 = arith.constant 0 : index
    %c0_0 = arith.constant 0 : index
    %0 = vector.load %arg2[%c0, %c0_0] : memref<32x32xf32, #tpu.memory_space<vmem>>, vector<32x32xf32>
    %c0_1 = arith.constant 0 : index
    %c0_2 = arith.constant 0 : index
    %1 = vector.load %arg3[%c0_1, %c0_2] : memref<32x1xf32, #tpu.memory_space<vmem>>, vector<32x1xf32>
    %c0_3 = arith.constant 0 : index
    %c0_4 = arith.constant 0 : index
    %2 = vector.load %arg4[%c0_3, %c0_4] : memref<32x4xf32, #tpu.memory_space<vmem>>, vector<32x4xf32>
    %3 = tpu.iota {dimensions = array<i32: 0>} : vector<16x4xi32>
    %4 = tpu.iota {dimensions = array<i32: 1>} : vector<16x4xi32>
    %c4_i32 = arith.constant 4 : i32
    %5 = vector.broadcast %c4_i32 : i32 to vector<16x4xi32>
    %6 = arith.muli %4, %5 : vector<16x4xi32>
    %7 = arith.cmpi sge, %3, %6 : vector<16x4xi32>
    %c4_i32_5 = arith.constant 4 : i32
    %8 = vector.broadcast %c4_i32_5 : i32 to vector<16x4xi32>
    %9 = arith.addi %6, %8 : vector<16x4xi32>
    %10 = arith.cmpi slt, %3, %9 : vector<16x4xi32>
    %11 = arith.andi %7, %10 : vector<16x4xi1>
    %cst = arith.constant 2.500000e-01 : f32
    %cst_6 = arith.constant 0.000000e+00 : f32
    %12 = vector.broadcast %cst : f32 to vector<16x4xf32>
    %13 = vector.broadcast %cst_6 : f32 to vector<16x4xf32>
    %14 = arith.select %11, %12, %13 : vector<16x4xi1>, vector<16x4xf32>
    %c0_7 = arith.constant 0 : index
    %c0_8 = arith.constant 0 : index
    %c0_9 = arith.constant 0 : index
    %15 = vector.load %arg1[%c0_7, %c0_8, %c0_9] : memref<2x32x16xf32, #tpu.memory_space<vmem>>, vector<1x32x16xf32>
    %16 = vector.shape_cast %15 : vector<1x32x16xf32> to vector<32x16xf32>
    %cst_10 = arith.constant dense<0.000000e+00> : vector<32x16xf32>
    %17 = tpu.matmul %0, %16, %cst_10 {dimension_numbers = #tpu.dot_dimension_numbers<[1], [0], [0], [1], [0, 0, 1, 1], [], []>} : vector<32x32xf32>, vector<32x16xf32>, vector<32x16xf32> -> vector<32x16xf32>
    %18 = vector.broadcast %1 : vector<32x1xf32> to vector<32x16xf32>
    %19 = arith.addf %17, %18 : vector<32x16xf32>
    %cst_11 = arith.constant 0.000000e+00 : f32
    %20 = vector.broadcast %cst_11 : f32 to vector<32x16xf32>
    %21 = arith.maximumf %19, %20 : vector<32x16xf32>
    %cst_12 = arith.constant dense<0.000000e+00> : vector<32x4xf32>
    %22 = tpu.matmul %21, %14, %cst_12 {dimension_numbers = #tpu.dot_dimension_numbers<[1], [0], [0], [1], [0, 0, 1, 1], [], []>} : vector<32x16xf32>, vector<16x4xf32>, vector<32x4xf32> -> vector<32x4xf32>
    %23 = arith.addf %22, %2 : vector<32x4xf32>
    %c0_13 = arith.constant 0 : index
    %c0_14 = arith.constant 0 : index
    %c0_15 = arith.constant 0 : index
    %24 = vector.load %arg5[%c0_13, %c0_14, %c0_15] : memref<2x32x4xf32, #tpu.memory_space<vmem>>, vector<1x32x4xf32>
    %25 = vector.shape_cast %24 : vector<1x32x4xf32> to vector<32x4xf32>
    %26 = vector.shape_cast %23 : vector<32x4xf32> to vector<1x32x4xf32>
    tpu.vector_store %arg5[%c0_13, %c0_14, %c0_15], %26 {strides = array<i32>} : memref<2x32x4xf32, #tpu.memory_space<vmem>>, vector<1x32x4xf32>,
    %c1 = arith.constant 1 : index
    %c0_16 = arith.constant 0 : index
    %c0_17 = arith.constant 0 : index
    %27 = vector.load %arg1[%c1, %c0_16, %c0_17] : memref<2x32x16xf32, #tpu.memory_space<vmem>>, vector<1x32x16xf32>
    %28 = vector.shape_cast %27 : vector<1x32x16xf32> to vector<32x16xf32>
    %cst_18 = arith.constant dense<0.000000e+00> : vector<32x16xf32>
    %29 = tpu.matmul %0, %28, %cst_18 {dimension_numbers = #tpu.dot_dimension_numbers<[1], [0], [0], [1], [0, 0, 1, 1], [], []>} : vector<32x32xf32>, vector<32x16xf32>, vector<32x16xf32> -> vector<32x16xf32>
    %30 = vector.broadcast %1 : vector<32x1xf32> to vector<32x16xf32>
    %31 = arith.addf %29, %30 : vector<32x16xf32>
    %cst_19 = arith.constant 0.000000e+00 : f32
    %32 = vector.broadcast %cst_19 : f32 to vector<32x16xf32>
    %33 = arith.maximumf %31, %32 : vector<32x16xf32>
    %cst_20 = arith.constant dense<0.000000e+00> : vector<32x4xf32>
    %34 = tpu.matmul %33, %14, %cst_20 {dimension_numbers = #tpu.dot_dimension_numbers<[1], [0], [0], [1], [0, 0, 1, 1], [], []>} : vector<32x16xf32>, vector<16x4xf32>, vector<32x4xf32> -> vector<32x4xf32>
    %35 = arith.addf %34, %2 : vector<32x4xf32>
    %c1_21 = arith.constant 1 : index
    %c0_22 = arith.constant 0 : index
    %c0_23 = arith.constant 0 : index
    %36 = vector.load %arg5[%c1_21, %c0_22, %c0_23] : memref<2x32x4xf32, #tpu.memory_space<vmem>>, vector<1x32x4xf32>
    %37 = vector.shape_cast %36 : vector<1x32x4xf32> to vector<32x4xf32>
    %38 = vector.shape_cast %35 : vector<32x4xf32> to vector<1x32x4xf32>
    tpu.vector_store %arg5[%c1_21, %c0_22, %c0_23], %38 {strides = array<i32>} : memref<2x32x4xf32, #tpu.memory_space<vmem>>, vector<1x32x4xf32>,
    return
  }
  func.func @transform_0(%arg0: i32) -> (i32, i32, i32) {
    %c0_i32 = arith.constant 0 : i32
    %c0_i32_0 = arith.constant 0 : i32
    %c0_i32_1 = arith.constant 0 : i32
    return %arg0, %c0_i32, %c0_i32_0 : i32, i32, i32
  }
  func.func @transform_1(%arg0: i32) -> (i32, i32) {
    %c0_i32 = arith.constant 0 : i32
    %c0_i32_0 = arith.constant 0 : i32
    %c0_i32_1 = arith.constant 0 : i32
    return %c0_i32, %c0_i32_0 : i32, i32
  }
  func.func @transform_2(%arg0: i32) -> (i32, i32) {
    %c0_i32 = arith.constant 0 : i32
    %c0_i32_0 = arith.constant 0 : i32
    %c0_i32_1 = arith.constant 0 : i32
    return %c0_i32, %c0_i32_0 : i32, i32
  }
  func.func @transform_3(%arg0: i32) -> (i32, i32) {
    %c0_i32 = arith.constant 0 : i32
    %c0_i32_0 = arith.constant 0 : i32
    %c0_i32_1 = arith.constant 0 : i32
    return %c0_i32, %c0_i32_0 : i32, i32
  }
  func.func @transform_4(%arg0: i32) -> (i32, i32, i32) {
    %c0_i32 = arith.constant 0 : i32
    %c0_i32_0 = arith.constant 0 : i32
    %c0_i32_1 = arith.constant 0 : i32
    return %arg0, %c0_i32, %c0_i32_0 : i32, i32, i32
  }
}

</mosaic_0001>

<bundles_post_ra>
// kernel: tpu_custom_call.1
= control target key start
LH: loop header
LB: loop body
LE: loop exit
PB: predicated region body
PF: predicated region fallthrough
CT: control target
= control target key end

     0   :  { %vm68_vm0 = vcmask 261120   ;;  %v605_v3 = vmov 0   ;;  %v29_v15 = vlaneseq  ;;  %v606_v21 = vmov 0.25|0.25   ;;  %s744_s0 = inlined_call_operand.vmem [shape: f32[2,32,16], index: 0, kind: input, shape index: {}]   ;;  %s745_s1 = inlined_call_operand.vmem [shape: f32[32,32], index: 1, kind: input, shape index: {}]   ;;  %s746_s2 = inlined_call_operand.vmem [shape: f32[32,1], index: 2, kind: input, shape index: {}]   ;;  %s747_s3 = inlined_call_operand.vmem [shape: f32[32,4], index: 3, kind: input, shape index: {}]   ;;  %s748_s4 = inlined_call_operand.vmem [shape: f32[2,32,4], index: 4, kind: output, shape index: {}]  }
   0x1   :  { %v44_v0 = vld [vmem:[%s744_s0] sm:$0xff]  ;;  %v45_v1 = vld [vmem:[%s744_s0 + $0x8] sm:$0xff]  ;;  %v46_v2 = vld [vmem:[%s744_s0 + $0x10] sm:$0xff]  ;;  %603 = vset.pattern.permute.xlu0 %v605_v3  ;;  %604 = vset.pattern.permute.xlu1 %v605_v3  ;;  %vm170_vm8 = vcmask 130048   ;;  %vm268_vm9 = vcmask 31744  }
   0x2   :  { %v577_v4 = vpack.c.bf16 %v45_v1, %v44_v0  ;;  %v47_v5 = vld [vmem:[%s744_s0 + $0x18] sm:$0xff]  ;;  %v647_v6 = vld [vmem:[%s745_s1] sm:$0xff]  ;;  %v23_v9 = vld [vmem:[%s746_s2 + $0x10] sm:$0xff]  ;;  %v33_v16 = vand.u32 127, %v29_v15  ;;  %v30_v17 = vshrl.u32 %v29_v15, 7 }
   0x3   :  { %v581_v7 = vpack.c.bf16 %v47_v5, %v46_v2  ;;  %537 = vmatprep.mubr.msk.f32.mxu0 %vm68_vm0, %v647_v6  ;;  %v21_v8 = vld [vmem:[%s746_s2] sm:$0xff]  ;;  %60 = vperm.xlu1 %604, %v23_v9   ;;  %v22_v10 = vld [vmem:[%s746_s2 + $0x8] sm:$0xff]  ;;  %v24_v11 = vld [vmem:[%s746_s2 + $0x18] sm:$0xff] }
   0x4   :  { %578 = vmatprep.subr.bf16.mxu0 %v577_v4  ;;  %50 = vperm.xlu0 %603, %v21_v8   ;;  %v18_v12 = vld [vmem:[%s745_s1 + $0x8] sm:$0xff]  ;;  %v19_v13 = vld [vmem:[%s745_s1 + $0x10] sm:$0xff]  ;;  %v20_v14 = vld [vmem:[%s745_s1 + $0x18] sm:$0xff]  ;;  %v34_v18 = vmul.u32 4, %v33_v16  ;;  %v31_v19 = vadd.s32 8, %v30_v17 }
   0x5   :  { %580 = vmatpush3.bf16.msra.mxu0 %v577_v4  ;;  %v483_v22 = vld [vmem:[%s744_s0 + $0x20] sm:$0xff]  ;;  %v484_v23 = vld [vmem:[%s744_s0 + $0x28] sm:$0xff]  ;;  %v485_v32 = vld [vmem:[%s744_s0 + $0x30] sm:$0xff] }
   0x6   :  { %582 = vmatprep.subr.bf16.mxu0 %v581_v7  ;;  %v37_v20 = vadd.s32 4, %v34_v18  ;;  %vm35_vm1 = vcmp.ge.s32.totalorder %v30_v17, %v34_v18  ;;  %vm36_vm2 = vcmp.ge.s32.totalorder %v31_v19, %v34_v18  ;;  %v589_v24 = vpack.c.bf16 %v484_v23, %v483_v22  ;;  %v486_v33 = vld [vmem:[%s744_s0 + $0x38] sm:$0xff]  ;;  %v26_v44 = vld [vmem:[%s747_s3 + $0x8] sm:$0xff]  ;;  %v25_v45 = vld [vmem:[%s747_s3] sm:$0xff] }
   0x7   :  { %65 = vperm.xlu1 %604, %v24_v11   ;;  %v593_v40 = vpack.c.bf16 %v486_v33, %v485_v32  ;;  %v28_v50 = vld [vmem:[%s747_s3 + $0x18] sm:$0xff]  ;;  %v27_v51 = vld [vmem:[%s747_s3 + $0x10] sm:$0xff] }
   0x8   :  { %55 = vperm.xlu0 %603, %v22_v10   ;;  %vm38_vm3 = vcmp.lt.s32.totalorder %v30_v17, %v37_v20  ;;  %vm39_vm4 = vcmp.lt.s32.totalorder %v31_v19, %v37_v20 }
   0x9   :  { %584 = vmatpush3.bf16.msra.mxu0 %v581_v7  ;;  %vm40_vm5 = vmand %vm35_vm1, %vm38_vm3 }
   0xa   :  { %vm41_vm6 = vmand %vm36_vm2, %vm39_vm4 }
   0xb   :  { %vm585_vm7 = vmpackc.low %vm41_vm6, %vm40_vm5 }
   0xc   :  { %538 = vmatmul.mubr.msk.f32.vlgmr.msra.gmra.mrb[0].mxu0 %vm68_vm0, %v18_v12  ;;  %586 = vmatprep.subr.msk.bf16.mxu1 %vm585_vm7, %v606_v21 }
   0xd   :  { %540 = vmatprep.mubr.msk.f32.mxu0 %vm68_vm0, %v19_v13  ;;  %598 = vmatprep.subr.msk.bf16.mxu0 %vm585_vm7, %v606_v21 }
   0xe   :  { %588 = vmatpush3.bf16.msk.msra.mxu1 %vm585_vm7, %v606_v21  ;;  %600 = vmatpush3.bf16.msk.msra.mxu0 %vm585_vm7, %v606_v21 }
   0xf   :  { %590 = vmatprep.subr.bf16.mxu1 %v589_v24 }
  0x10   :  { %541 = vmatmul.mubr.msk.f32.gmra.mrb[2].mxu0 %vm68_vm0, %v20_v14 }
  0x82   :  { %v61_v26 = vpop.permute.xlu1 %60 }
  0x83   :  { %v51_v25 = vpop.permute.xlu0 %50 }
  0x86   :  { %v66_v35 = vpop.permute.xlu1 %65 }
  0x87   :  { %v56_v27 = vpop.permute.xlu0 %55 }
  0xdf   :  { %v539_v28 = vpop.f32.mrb[0].mxu0 }
  0xe0   :  { %v153_v29 = vadd.f32 %v539_v28, %v56_v27  ;;  %v147_v30 = vpop.f32.mrb[1].mxu0 }
  0xe1   :  { %v148_v31 = vadd.f32 %v147_v30, %v51_v25 }
  0xe2   :  { %v167_v37 = vmax.f32 %v153_v29, 0.0 }
  0xe3   :  { %v166_v34 = vmax.f32 %v148_v31, 0.0  ;;  %v542_v36 = vpop.f32.mrb[2].mxu0 }
  0xe4   :  { %v163_v38 = vadd.f32 %v542_v36, %v66_v35  ;;  %v157_v39 = vpop.f32.mrb[3].mxu0 }
  0xe5   :  { %v158_v41 = vadd.f32 %v157_v39, %v61_v26  ;;  %547 = vmatprep.mubr.msk.f32.mxu1 %vm170_vm8, %v166_v34 }
  0xe6   :  { %548 = vmatmul.mubr.msk.f32.vlgmr.msra.gmra.mrb[0].mxu1 %vm170_vm8, %v167_v37  ;;  %v169_v43 = vmax.f32 %v163_v38, 0.0 }
  0xe7   :  { %v168_v42 = vmax.f32 %v158_v41, 0.0  ;;  %592 = vmatpush3.bf16.msra.mxu1 %v589_v24 }
  0xe8   :  { %594 = vmatprep.subr.bf16.mxu1 %v593_v40 }
  0xe9   :  { %550 = vmatprep.mubr.msk.f32.mxu1 %vm170_vm8, %v168_v42 }
  0xea   :  { %551 = vmatmul.mubr.msk.f32.gmra.mrb[2].mxu1 %vm170_vm8, %v169_v43 }
  0xeb   :  { %596 = vmatpush3.bf16.msra.mxu1 %v593_v40  ;;  %561 = vmatprep.mubr.msk.f32.mxu1 %vm68_vm0, %v647_v6 }
  0xee   :  { %562 = vmatmul.mubr.msk.f32.vlgmr.msra.gmra.mrb[4].mxu1 %vm68_vm0, %v18_v12 }
  0xef   :  { %564 = vmatprep.mubr.msk.f32.mxu1 %vm68_vm0, %v19_v13 }
  0xf2   :  { %565 = vmatmul.mubr.msk.f32.gmra.mrb[6].mxu1 %vm68_vm0, %v20_v14 }
 0x1b9   :  { %v549_v46 = vpop.f32.mrb[0].mxu1 }
 0x1ba   :  { %v255_v47 = vadd.f32 %v549_v46, %v26_v44  ;;  %v249_v48 = vpop.f32.mrb[1].mxu1 }
 0x1bb   :  { %v250_v49 = vadd.f32 %v249_v48, %v25_v45 }
 0x1bc   :  { %270 = vst.msk [vmem:[%s748_s4 + $0x8] sm:$0xff] %vm268_vm9, %v255_v47 }
 0x1bd   :  { %269 = vst.msk [vmem:[%s748_s4] sm:$0xff] %vm268_vm9, %v250_v49  ;;  %v552_v52 = vpop.f32.mrb[2].mxu1 }
 0x1be   :  { %v265_v53 = vadd.f32 %v552_v52, %v28_v50  ;;  %v259_v54 = vpop.f32.mrb[3].mxu1 }
 0x1bf   :  { %v260_v55 = vadd.f32 %v259_v54, %v27_v51 }
 0x1c0   :  { %272 = vst.msk [vmem:[%s748_s4 + $0x18] sm:$0xff] %vm268_vm9, %v265_v53 }
 0x1c1   :  { %271 = vst.msk [vmem:[%s748_s4 + $0x10] sm:$0xff] %vm268_vm9, %v260_v55  ;;  %v563_v56 = vpop.f32.mrb[4].mxu1 }
 0x1c2   :  { %v350_v57 = vadd.f32 %v563_v56, %v56_v27  ;;  %v344_v58 = vpop.f32.mrb[5].mxu1 }
 0x1c3   :  { %v345_v59 = vadd.f32 %v344_v58, %v51_v25 }
 0x1c4   :  { %v364_v62 = vmax.f32 %v350_v57, 0.0 }
 0x1c5   :  { %v363_v60 = vmax.f32 %v345_v59, 0.0  ;;  %v566_v61 = vpop.f32.mrb[6].mxu1 }
 0x1c6   :  { %v360_v63 = vadd.f32 %v566_v61, %v66_v35  ;;  %v354_v0 = vpop.f32.mrb[7].mxu1 }
 0x1c7   :  { %v355_v1 = vadd.f32 %v354_v0, %v61_v26  ;;  %571 = vmatprep.mubr.msk.f32.mxu0 %vm170_vm8, %v363_v60 }
 0x1c8   :  { %572 = vmatmul.mubr.msk.f32.vlgmr.msra.gmra.mrb[4].mxu0 %vm170_vm8, %v364_v62  ;;  %v366_v3 = vmax.f32 %v360_v63, 0.0 }
 0x1c9   :  { %v365_v2 = vmax.f32 %v355_v1, 0.0 }
 0x1cb   :  { %574 = vmatprep.mubr.msk.f32.mxu0 %vm170_vm8, %v365_v2 }
 0x1cc   :  { %575 = vmatmul.mubr.msk.f32.gmra.mrb[6].mxu0 %vm170_vm8, %v366_v3 }
 0x29b   :  { %v573_v4 = vpop.f32.mrb[4].mxu0 }
 0x29c   :  { %v451_v5 = vadd.f32 %v573_v4, %v26_v44  ;;  %v445_v6 = vpop.f32.mrb[5].mxu0 }
 0x29d   :  { %v446_v7 = vadd.f32 %v445_v6, %v25_v45 }
 0x29e   :  { %498 = vst.msk [vmem:[%s748_s4 + $0x28] sm:$0xff] %vm268_vm9, %v451_v5 }
 0x29f   :  { %497 = vst.msk [vmem:[%s748_s4 + $0x20] sm:$0xff] %vm268_vm9, %v446_v7  ;;  %v576_v8 = vpop.f32.mrb[6].mxu0 }
 0x2a0   :  { %v461_v9 = vadd.f32 %v576_v8, %v28_v50  ;;  %v455_v10 = vpop.f32.mrb[7].mxu0 }
 0x2a1   :  { %v456_v11 = vadd.f32 %v455_v10, %v27_v51 }
 0x2a2   :  { %500 = vst.msk [vmem:[%s748_s4 + $0x38] sm:$0xff] %vm268_vm9, %v461_v9 }
 0x2a3   :  { %499 = vst.msk [vmem:[%s748_s4 + $0x30] sm:$0xff] %vm268_vm9, %v456_v11 }

</bundles_post_ra>
